<compile_context>
chip_gen: v5e
topology: v5e:2x2
jax: 0.10.0
libtpu: 0.0.40
codegen_flags: <defaults>
</compile_context>

<pallas_src>
import jax
import jax.numpy as jnp
import numpy as np
from jax.experimental import pallas as pl
from jax.experimental.pallas import tpu as pltpu

# ----------------------------------------------------------------------------
# Small synthetic configuration (mirrors Up.__init__ arguments)
# ----------------------------------------------------------------------------
N = 2                      # batch
CIN = 4                    # in_channels
COUT = 2                   # out_channels
D_IN, H_IN, W_IN = 4, 8, 8 # input spatial dims (D = temporal)

IN_NO = 4                  # args.in_no
KT = 3                     # args.krnl_size_t
K = 3                      # args.krnl_size
PAD_T = 1                  # args.padding_t
PAD = 1                    # args.padding
DEPTH = 0
STRIDE = 2
BILINEAR = False           # module default path
# TODO(synk): the bilinear=True branch (nn.Upsample trilinear) is not used by
# this configuration and is not implemented.

# output_padding logic copied from Up.__init__ (float division intentionally
# mirrors the PyTorch source's `args.in_no / 2 ** depth % 2` semantics)
if DEPTH == 0:
    OUT_PAD_T = 0 if IN_NO % 2 == 0 else 1
else:
    OUT_PAD_T = 0 if (IN_NO / 2 ** DEPTH) % 2 == 0 else 1
OUT_PAD_HW = 1

# ConvTranspose3d output sizes
DOUT = (D_IN - 1) * STRIDE - 2 * PAD_T + KT + OUT_PAD_T
HOUT = (H_IN - 1) * STRIDE - 2 * PAD + K + OUT_PAD_HW
WOUT = (W_IN - 1) * STRIDE - 2 * PAD + K + OUT_PAD_HW

# The polyphase construction assumes stride 2 and that every valid tap maps to
# an input offset in {0, 1} (single high-side halo plane).
assert STRIDE == 2
for k_, p_ in ((KT, PAD_T), (K, PAD)):
    for r in range(STRIDE):
        for kk in range(k_):
            if (r + p_ - kk) % STRIDE == 0:
                assert 0 <= (r + p_ - kk) // STRIDE <= 1, "needs a larger halo"
assert DOUT <= STRIDE * D_IN and HOUT <= STRIDE * H_IN and WOUT <= STRIDE * W_IN

ROWS = STRIDE ** 3 * COUT              # 16 : (parity class, out-channel) rows
COLS = 8 * CIN                         # 32 : (2x2x2 neighbour, in-channel) K dim
COLS_AUG = 8 * ((COLS + 1 + 7) // 8)   # 40 : + bias column, sublane-aligned
LANE_Q = D_IN * H_IN * W_IN            # 256: flattened coarse (d,h,w) lane axis
assert LANE_Q % 128 == 0               # lane-dense output / RHS

# ----------------------------------------------------------------------------
# Static polyphase weight indexing (numpy, computed once at import):
#   W_aug[row, col] = wvec[_W_IDX[row, col]] * _W_MASK[row, col]
# where wvec = concat(weight.reshape(-1), 2*bias),
#   row = ((rd*2 + rh)*2 + rw)*COUT + co
#   col = ((dd*2 + dh)*2 + dw)*CIN + ci           (col == COLS -> bias column)
#   tap = weight[ci, co, kd, kh, kw],  k? = r? + pad? - 2*d?  (masked if OOB)
# ----------------------------------------------------------------------------
_W_IDX = np.zeros((ROWS, COLS_AUG), np.int32)
_W_MASK = np.zeros((ROWS, COLS_AUG), np.float32)
_NW = CIN * COUT * KT * K * K
for rd in range(STRIDE):
    for rh in range(STRIDE):
        for rw in range(STRIDE):
            parity = (rd * 2 + rh) * 2 + rw
            for co in range(COUT):
                row = parity * COUT + co
                _W_IDX[row, COLS] = _NW + co          # 2*bias column
                _W_MASK[row, COLS] = 1.0
                for dd in range(2):
                    for dh in range(2):
                        for dw in range(2):
                            kd = rd + PAD_T - STRIDE * dd
                            kh = rh + PAD - STRIDE * dh
                            kw = rw + PAD - STRIDE * dw
                            if 0 <= kd < KT and 0 <= kh < K and 0 <= kw < K:
                                for ci in range(CIN):
                                    col = ((dd * 2 + dh) * 2 + dw) * CIN + ci
                                    _W_IDX[row, col] = (
                                        ci * (COUT * KT * K * K)
                                        + co * (KT * K * K)
                                        + kd * (K * K) + kh * K + kw)
                                    _W_MASK[row, col] = 1.0


# ----------------------------------------------------------------------------
# Pallas kernel: one sample per grid step, pure MXU matmul + lane-dense store.
# ----------------------------------------------------------------------------
def up_kernel(w_ref, x_ref, o_ref):
    # w_ref : VMEM (ROWS, COLS_AUG)    folded polyphase weights (+2*bias col)
    # x_ref : VMEM (COLS_AUG, LANE_Q)  prebuilt im2col patches (+ones row)
    # o_ref : VMEM (ROWS, LANE_Q)      all parity classes / channels / D rows
    y = jnp.dot(w_ref[...], x_ref[...], preferred_element_type=jnp.float32)
    o_ref[...] = y.astype(o_ref.dtype)


# ----------------------------------------------------------------------------
# Host-side glue (cheap layout plumbing only)
# ----------------------------------------------------------------------------
@jax.jit
def up_forward(x1, x2, weight, bias):
    # linearity fold: the SAME ConvTranspose3d is applied to x1 and x2
    xs = x1 + x2

    # im2col with a one-voxel high-side zero halo, built host-side so the
    # kernel body has zero cross-lane work.
    xs_pad = jnp.pad(xs, ((0, 0), (0, 0), (0, 1), (0, 1), (0, 1)))
    slabs = [xs_pad[:, :, dd:dd + D_IN, dh:dh + H_IN, dw:dw + W_IN]
             for dd in range(2) for dh in range(2) for dw in range(2)]
    patches = jnp.stack(slabs, axis=1).reshape(N, COLS, LANE_Q)
    extra = jnp.concatenate(
        [jnp.ones((N, 1, LANE_Q), xs.dtype),                       # bias row
         jnp.zeros((N, COLS_AUG - COLS - 1, LANE_Q), xs.dtype)],   # align pad
        axis=1)
    patches = jnp.concatenate([patches, extra], axis=1)   # (N, COLS_AUG, 256)

    # polyphase weight matrix: one static gather + mask (no slice/concat soup)
    wvec = jnp.concatenate([weight.reshape(-1), 2.0 * bias])
    w_aug = (wvec[_W_IDX] * _W_MASK).astype(jnp.float32)  # (ROWS, COLS_AUG)

    out = pl.pallas_call(
        up_kernel,
        out_shape=jax.ShapeDtypeStruct((N, ROWS, LANE_Q), jnp.float32),
        grid=(N,),
        in_specs=[
            pl.BlockSpec((ROWS, COLS_AUG), lambda n: (0, 0)),          # weights
            pl.BlockSpec((None, COLS_AUG, LANE_Q), lambda n: (n, 0, 0)),
        ],
        out_specs=pl.BlockSpec((None, ROWS, LANE_Q), lambda n: (n, 0, 0)),
        compiler_params=pltpu.CompilerParams(
            dimension_semantics=("parallel",)),
    )(w_aug, patches)

    # pixel-shuffle epilogue: interleave the 8 parity classes back to NCDHW
    y = out.reshape(N, STRIDE, STRIDE, STRIDE, COUT, D_IN, H_IN, W_IN)
    y = y.transpose(0, 4, 5, 1, 6, 2, 7, 3)   # (N, CO, D, rd, H, rh, W, rw)
    y = y.reshape(N, COUT, STRIDE * D_IN, STRIDE * H_IN, STRIDE * W_IN)
    return y[:, :, :DOUT, :HOUT, :WOUT]


# ----------------------------------------------------------------------------
# Pure-JAX reference (ConvTranspose3d == lhs-dilated conv with flipped kernel);
# computes the two transposed convs separately, so it also checks the fold.
# ----------------------------------------------------------------------------
PAD_LO_T = KT - 1 - PAD_T
PAD_HI_T = KT - 1 - PAD_T + OUT_PAD_T
PAD_LO_S = K - 1 - PAD
PAD_HI_S = K - 1 - PAD + OUT_PAD_HW


def _conv_transpose3d_ref(x, weight, bias):
    w_conv = jnp.flip(weight, axis=(2, 3, 4)).transpose(1, 0, 2, 3, 4)
    dn = jax.lax.conv_dimension_numbers(x.shape, w_conv.shape,
                                        ("NCDHW", "OIDHW", "NCDHW"))
    y = jax.lax.conv_general_dilated(
        x, w_conv, window_strides=(1, 1, 1),
        padding=[(PAD_LO_T, PAD_HI_T), (PAD_LO_S, PAD_HI_S), (PAD_LO_S, PAD_HI_S)],
        lhs_dilation=(STRIDE, STRIDE, STRIDE),
        dimension_numbers=dn,
        precision=jax.lax.Precision.HIGHEST)
    return y + bias[None, :, None, None, None]


def up_ref(x1, x2, weight, bias):
    return (_conv_transpose3d_ref(x2, weight, bias)
            + _conv_transpose3d_ref(x1, weight, bias))


if __name__ == "__main__":
    key = jax.random.PRNGKey(0)
    k1, k2, kw, kb = jax.random.split(key, 4)
    x1 = jax.random.normal(k1, (N, CIN, D_IN, H_IN, W_IN), jnp.float32)
    x2 = jax.random.normal(k2, (N, CIN, D_IN, H_IN, W_IN), jnp.float32)
    weight = 0.1 * jax.random.normal(kw, (CIN, COUT, KT, K, K), jnp.float32)
    bias = 0.1 * jax.random.normal(kb, (COUT,), jnp.float32)

    out = jax.block_until_ready(up_forward(x1, x2, weight, bias))

    ref = up_ref(x1, x2, weight, bias)
    assert out.shape == (N, COUT, DOUT, HOUT, WOUT), out.shape
    np.testing.assert_allclose(np.asarray(out), np.asarray(ref),
                               atol=1e-3, rtol=1e-3)
    print("KERNEL_OK")
</pallas_src>

<mosaic_0001>
module attributes {stable_mosaic.version = 11 : i64} {
  func.func @up_kernel(%arg0: i32, %arg1: memref<16x40xf32, #tpu.memory_space<vmem>>, %arg2: memref<1x40x256xf32, #tpu.memory_space<vmem>>, %arg3: memref<1x16x256xf32, #tpu.memory_space<vmem>>) attributes {dimension_semantics = [#tpu.dimension_semantics<parallel>], iteration_bounds = array<i64: 2>, scalar_prefetch = 0 : i64, scratch_operands = 0 : i64, tpu.core_type = #tpu.core_type<tc>, window_params = [{pipeline_mode = #tpu.pipeline_mode<synchronous>, transform_indices = @transform_0, window_bounds = array<i64: 16, 40>}, {transform_indices = @transform_1, window_bounds = array<i64: 1, 40, 256>}, {transform_indices = @transform_2, window_bounds = array<i64: 1, 16, 256>}]} {
    %c0 = arith.constant 0 : index
    %c0_0 = arith.constant 0 : index
    %0 = vector.load %arg1[%c0, %c0_0] : memref<16x40xf32, #tpu.memory_space<vmem>>, vector<16x40xf32>
    %c0_1 = arith.constant 0 : index
    %c0_2 = arith.constant 0 : index
    %c0_3 = arith.constant 0 : index
    %1 = vector.load %arg2[%c0_1, %c0_2, %c0_3] : memref<1x40x256xf32, #tpu.memory_space<vmem>>, vector<1x40x256xf32>
    %2 = vector.shape_cast %1 : vector<1x40x256xf32> to vector<40x256xf32>
    %cst = arith.constant dense<0.000000e+00> : vector<16x256xf32>
    %3 = tpu.matmul %0, %2, %cst {dimension_numbers = #tpu.dot_dimension_numbers<[1], [0], [0], [1], [0, 0, 1, 1], [], []>} : vector<16x40xf32>, vector<40x256xf32>, vector<16x256xf32> -> vector<16x256xf32>
    %c0_4 = arith.constant 0 : index
    %c0_5 = arith.constant 0 : index
    %c0_6 = arith.constant 0 : index
    %4 = vector.load %arg3[%c0_4, %c0_5, %c0_6] : memref<1x16x256xf32, #tpu.memory_space<vmem>>, vector<1x16x256xf32>
    %5 = vector.shape_cast %4 : vector<1x16x256xf32> to vector<16x256xf32>
    %6 = vector.shape_cast %3 : vector<16x256xf32> to vector<1x16x256xf32>
    tpu.vector_store %arg3[%c0_4, %c0_5, %c0_6], %6 {strides = array<i32>} : memref<1x16x256xf32, #tpu.memory_space<vmem>>, vector<1x16x256xf32>,
    return
  }
  func.func @transform_0(%arg0: i32) -> (i32, i32) {
    %c0_i32 = arith.constant 0 : i32
    %c0_i32_0 = arith.constant 0 : i32
    %c0_i32_1 = arith.constant 0 : i32
    return %c0_i32, %c0_i32_0 : i32, i32
  }
  func.func @transform_1(%arg0: i32) -> (i32, i32, i32) {
    %c0_i32 = arith.constant 0 : i32
    %c0_i32_0 = arith.constant 0 : i32
    %c0_i32_1 = arith.constant 0 : i32
    return %arg0, %c0_i32, %c0_i32_0 : i32, i32, i32
  }
  func.func @transform_2(%arg0: i32) -> (i32, i32, i32) {
    %c0_i32 = arith.constant 0 : i32
    %c0_i32_0 = arith.constant 0 : i32
    %c0_i32_1 = arith.constant 0 : i32
    return %arg0, %c0_i32, %c0_i32_0 : i32, i32, i32
  }
}

</mosaic_0001>

<bundles_post_ra>
// kernel: mul.0
= control target key start
LH: loop header
LB: loop body
LE: loop exit
PB: predicated region body
PF: predicated region fallthrough
CT: control target
= control target key end

     0   :  { %s34_s0 = inlined_call_operand.vmem [shape: f32[640], index: 0, kind: input, shape index: {}]   ;;  %s35_s1 = inlined_call_operand.vmem [shape: f32[640], index: 1, kind: input, shape index: {}]   ;;  %s36_s2 = inlined_call_operand.vmem [shape: f32[640], index: 2, kind: output, shape index: {}]  }
   0x1   :  { %v3_v0 = vld [vmem:[%s34_s0] sm:$0x1f] }
   0x2   :  { %v4_v1 = vld [vmem:[%s35_s1] sm:$0x1f] }
   0x3   :  { %v7_v2 = vmul.f32 %v4_v1, %v3_v0 }
   0x5   :  { %9 = vst [vmem:[%s36_s2] sm:$0xff] %v7_v2 }

// kernel: up_forward.1
= control target key start
LH: loop header
LB: loop body
LE: loop exit
PB: predicated region body
PF: predicated region fallthrough
CT: control target
= control target key end

     0   :  { %s325_s9 = smov 0   ;;  %s352_s0 = inlined_call_operand.vmem [shape: f32[16,40], index: 0, kind: input, shape index: {}]   ;;  %s353_s1 = inlined_call_operand.vmem [shape: f32[2,40,256], index: 1, kind: input, shape index: {}]   ;;  %s354_s2 = inlined_call_operand.vmem [shape: f32[2,16,256], index: 2, kind: output, shape index: {}]  }
   0x1 LB: > { %s268_s10 = sadd.s32 4294967295, %s308_s9   ;;  %p272_p0 = scmp.ge.s32.totalorder %s308_s9, 1  ;;  %s308_s9 = sphi %s325_s9, %s12_s9  }
   0x2   : > { %p112_p1 = scmp.lt.s32.totalorder %s308_s9, 3 }
   0x4   : > { %p113_p2 = pnand %p272_p0, %p112_p1 }
   0x5   : > { %p134_p3 = scmp.lt.s32.totalorder (!%p113_p2), %s268_s10, 1 }
   0x6   : > { %116 = sbr.rel (%p113_p2) target bundleno = 159 (0x9f), region = 28 }
   0xb   : > { %s356_s10 = smov (!%p134_p3, %s268_s10), 1  ;;  %v145_v10 = vld [vmem:[%s352_s0 + $0x8] sm:$0xff]  ;;  %vm156_vm0 = vcmask 326656   ;;  %v144_v11 = vld [vmem:[%s352_s0] sm:$0xff] }
   0xc   : > { %s293_s11 = smul.u32 80, %s356_s10  ;;  %s282_s19 = sshll.u32 %s356_s10, 5 }
   0xd   : > { %s143_s22 = scalar_lea.vmem %s354_s2, %s282_s19 }
   0xe   : > { %s138_s14 = scalar_lea.vmem %s353_s1, %s293_s11 }
   0xf   : > { %v154_v0 = vld [vmem:[%s138_s14 + $0x40] sm:$0xff]  ;;  %v155_v1 = vld [vmem:[%s138_s14 + $0x48] sm:$0xff]  ;;  %v152_v2 = vld [vmem:[%s138_s14 + $0x30] sm:$0xff] }
  0x10   : > { %283 = vmatpush.msra.mxu2 %v154_v0  ;;  %288 = vmatpush.msra.mxu3 %v155_v1  ;;  %v153_v3 = vld [vmem:[%s138_s14 + $0x38] sm:$0xff]  ;;  %v150_v4 = vld [vmem:[%s138_s14 + $0x20] sm:$0xff]  ;;  %v151_v5 = vld [vmem:[%s138_s14 + $0x28] sm:$0xff] }
  0x11   : > { %174 = vmatpush.msra.mxu0 %v154_v0  ;;  %197 = vmatpush.msra.mxu1 %v155_v1  ;;  %v148_v6 = vld [vmem:[%s138_s14 + $0x10] sm:$0xff]  ;;  %v149_v7 = vld [vmem:[%s138_s14 + $0x18] sm:$0xff]  ;;  %v146_v8 = vld [vmem:[%s138_s14] sm:$0xff] }
  0x12   : > { %284 = vmatpush.msra.mxu2 %v152_v2  ;;  %289 = vmatpush.msra.mxu3 %v153_v3  ;;  %v147_v9 = vld [vmem:[%s138_s14 + $0x8] sm:$0xff] }
  0x13   : > { %175 = vmatpush.msra.mxu0 %v152_v2  ;;  %198 = vmatpush.msra.mxu1 %v153_v3 }
  0x14   : > { %285 = vmatpush.msra.mxu2 %v150_v4  ;;  %290 = vmatpush.msra.mxu3 %v151_v5 }
  0x15   : > { %176 = vmatpush.msra.mxu0 %v150_v4  ;;  %199 = vmatpush.msra.mxu1 %v151_v5 }
  0x16   : > { %286 = vmatpush.msra.mxu2 %v148_v6  ;;  %291 = vmatpush.msra.mxu3 %v149_v7 }
  0x17   : > { %177 = vmatpush.msra.mxu0 %v148_v6  ;;  %200 = vmatpush.msra.mxu1 %v149_v7 }
  0x18   : > { %287 = vmatpush.msra.mxu2 %v146_v8  ;;  %292 = vmatpush.msra.mxu3 %v147_v9 }
  0x19   : > { %277 = vmatmul.msk.f32.vlgmr.msra.gmra.mxu2 %vm156_vm0, %v145_v10  ;;  %279 = vmatmul.msk.f32.vlgmr.msra.gmra.mxu3 %vm156_vm0, %v145_v10 }
  0x1a   : > { %178 = vmatpush.msra.mxu0 %v146_v8  ;;  %201 = vmatpush.msra.mxu1 %v147_v9 }
  0x1b   : > { %276 = vmatmul.msk.f32.vlgmr.msra.gmra.mxu0 %vm156_vm0, %v144_v11  ;;  %278 = vmatmul.msk.f32.vlgmr.msra.gmra.mxu1 %vm156_vm0, %v144_v11 }
  0x98   : > { %v180_v12 = vpop.f32.mrf.mxu0  ;;  %v203_v13 = vpop.f32.mrf.mxu1 }
  0x99   : > { %209 = vst [vmem:[%s143_s22] sm:$0xff] %v180_v12 }
  0x9a   : > { %210 = vst [vmem:[%s143_s22 + $0x8] sm:$0xff] %v203_v13 }
  0x9c   : > { %v183_v14 = vpop.f32.mrf.mxu2  ;;  %v206_v15 = vpop.f32.mrf.mxu3 }
  0x9d   : > { %211 = vst [vmem:[%s143_s22 + $0x10] sm:$0xff] %v183_v14 }
  0x9e   : > { %212 = vst [vmem:[%s143_s22 + $0x18] sm:$0xff] %v206_v15 }
  0x9f PF: > { %s12_s9 = sadd.s32 1, %s308_s9  }
  0xa0   : > { %p9_p4 = scmp.ge.s32.totalorder %s12_s9, 4  }
  0xa2   :  { %11 = sbr.rel (!%p9_p4) target bundleno = 1 (0x1), region = 58 }

</bundles_post_ra>
